<compile_context>
chip_gen: v6e
topology: v6e:2x2x1
jax: 0.10.0
libtpu: 0.0.40
codegen_flags: <defaults>
</compile_context>

<pallas_src>
import jax
import jax.numpy as jnp
from jax.experimental import pallas as pl
from jax.experimental.pallas import tpu as pltpu


# --------------------------------------------------------------------------
# Kernels
# --------------------------------------------------------------------------
def _ffn_resident_kernel(x_ref, w1_ref, b1_ref, w2_ref, b2_ref, o_ref):
    """Whole W1/W2 resident in VMEM; one row tile per grid step."""
    h = jnp.dot(x_ref[...], w1_ref[...], preferred_element_type=jnp.float32)
    h = jnp.maximum(h + b1_ref[...].astype(jnp.float32), 0.0)
    # TODO(synk): training-mode dropout (pltpu.prng_random_bits mask) omitted;
    # eval-mode dropout is the identity.
    y = jnp.dot(h.astype(w2_ref.dtype), w2_ref[...],
                preferred_element_type=jnp.float32)
    o_ref[...] = (y + b2_ref[...].astype(jnp.float32)).astype(o_ref.dtype)


def _ffn_streamed_kernel(x_ref, w1_ref, b1_ref, w2_ref, b2_ref, o_ref, acc_ref):
    """d_ff streamed as the reduction axis; f32 accumulator in VMEM scratch."""
    k = pl.program_id(1)

    @pl.when(k == 0)
    def _():
        acc_ref[...] = jnp.zeros_like(acc_ref)

    # h_k = relu(x @ W1[:, k-tile] + b1[k-tile])          -> (tm, tf) f32
    h = jnp.dot(x_ref[...], w1_ref[...], preferred_element_type=jnp.float32)
    h = jnp.maximum(h + b1_ref[...].astype(jnp.float32), 0.0)
    # TODO(synk): training-mode dropout omitted; eval-mode dropout is identity.

    # y += h_k @ W2[k-tile, :]                            -> (tm, d_model) f32
    acc_ref[...] += jnp.dot(h.astype(w2_ref.dtype), w2_ref[...],
                            preferred_element_type=jnp.float32)

    @pl.when(k == pl.num_programs(1) - 1)
    def _():
        o_ref[...] = (acc_ref[...]
                      + b2_ref[...].astype(jnp.float32)).astype(o_ref.dtype)


# --------------------------------------------------------------------------
# Helpers
# --------------------------------------------------------------------------
def _round_up(x, m):
    return (x + m - 1) // m * m


def _vmem_budget_bytes():
    """~80% of per-core VMEM (128 MiB on v5e/v6e, 64 MiB on v7x)."""
    cap = None
    try:
        info = pltpu.get_tpu_info()
        cap = getattr(info, "vmem_capacity_bytes", None) or \
              getattr(info, "vmem_bytes", None)
    except Exception:
        cap = None
    if not cap:
        cap = 64 << 20          # conservative fallback (v7x per-core size)
    return int(cap * 0.8)


def _fast_need(tm, d_model, d_ff, in_it, out_it, w_it, b_it):
    return (2 * tm * d_model * (in_it + out_it)            # x/out tiles (2-buf)
            + 2 * d_model * d_ff * w_it                    # W1 + W2 resident
            + (d_ff + d_model) * b_it                      # biases
            + tm * d_ff * 4 + tm * d_model * 4)            # f32 intermediates


def _stream_need(tm, tf, d_model, in_it, out_it, w_it, b_it):
    return (2 * tm * d_model * (in_it + out_it)            # x/out tiles (2-buf)
            + 2 * 2 * d_model * tf * w_it                  # W1/W2 slabs (2-buf)
            + 2 * tf * b_it + d_model * b_it               # bias slabs
            + tm * d_model * 4                             # f32 accumulator
            + tm * tf * 4)                                 # f32 h intermediate


# --------------------------------------------------------------------------
# Wrapper
# --------------------------------------------------------------------------
def feed_forward_block(x, w1, b1, w2, b2, *, row_tile=512, ff_tile=512,
                       compute_dtype=None, force_stream=False):
    """x: (..., d_model); w1: (d_model, d_ff); b1: (d_ff,);
       w2: (d_ff, d_model); b2: (d_model,).  Weights stored (d_in, d_out)
       (i.e. transposed relative to torch's nn.Linear (out, in) layout).

       compute_dtype: optional matmul operand dtype (e.g. jnp.bfloat16) with
       f32 accumulation; output keeps x.dtype."""
    d_model = x.shape[-1]
    d_ff = w1.shape[1]
    orig_shape = x.shape
    out_dtype = x.dtype

    x2d = x.reshape(-1, d_model)
    M = x2d.shape[0]

    if compute_dtype is not None:
        x2d = x2d.astype(compute_dtype)
        w1 = w1.astype(compute_dtype)
        w2 = w2.astype(compute_dtype)

    in_it = x2d.dtype.itemsize
    w_it = w1.dtype.itemsize
    b_it = b1.dtype.itemsize
    out_it = jnp.dtype(out_dtype).itemsize

    budget = _vmem_budget_bytes()

    # ---- row tile: multiple of 8 sublanes; keep >= 2 tiles for megacore ----
    tm = min(row_tile, _round_up(M, 8))
    if M > 8 and _round_up(M, tm) // tm < 2:
        tm = min(tm, max(8, _round_up(pl.cdiv(M, 2), 8)))

    b1_2d = b1.reshape(1, d_ff)
    b2_2d = b2.reshape(1, d_model)

    use_fast = (not force_stream) and (
        _fast_need(tm, d_model, d_ff, in_it, out_it, w_it, b_it) <= budget)

    flops = 4 * _round_up(M, tm) * d_model * d_ff

    if use_fast:
        # -------------------- resident-weights fast path --------------------
        M_pad = _round_up(M, tm)
        if M_pad != M:
            x2d = jnp.pad(x2d, ((0, M_pad - M), (0, 0)))

        bytes_acc = int(x2d.size * in_it + (w1.size + w2.size) * w_it
                        + (b1.size + b2.size) * b_it + M_pad * d_model * out_it)

        out = pl.pallas_call(
            _ffn_resident_kernel,
            out_shape=jax.ShapeDtypeStruct((M_pad, d_model), out_dtype),
            grid_spec=pltpu.PrefetchScalarGridSpec(
                num_scalar_prefetch=0,
                grid=(M_pad // tm,),
                in_specs=[
                    pl.BlockSpec((tm, d_model), lambda i: (i, 0)),     # x rows
                    pl.BlockSpec((d_model, d_ff), lambda i: (0, 0)),   # W1 (resident)
                    pl.BlockSpec((1, d_ff), lambda i: (0, 0)),         # b1
                    pl.BlockSpec((d_ff, d_model), lambda i: (0, 0)),   # W2 (resident)
                    pl.BlockSpec((1, d_model), lambda i: (0, 0)),      # b2
                ],
                out_specs=pl.BlockSpec((tm, d_model), lambda i: (i, 0)),
            ),
            compiler_params=pltpu.CompilerParams(
                dimension_semantics=("parallel",),
                vmem_limit_bytes=budget),
            cost_estimate=pl.CostEstimate(
                flops=flops, transcendentals=0, bytes_accessed=bytes_acc),
        )(x2d, w1, b1_2d, w2, b2_2d)
    else:
        # ------------------------ streamed d_ff path ------------------------
        # tf: 256-aligned (MXU-friendly on v6e/v7x), shrunk to fit VMEM.
        tf = max(256, _round_up(min(ff_tile, _round_up(d_ff, 256)), 256))
        while (_stream_need(tm, tf, d_model, in_it, out_it, w_it, b_it) > budget
               and tf > 256):
            tf -= 256
        while (_stream_need(tm, tf, d_model, in_it, out_it, w_it, b_it) > budget
               and tm > 8):
            tm = max(8, _round_up(tm // 2, 8))

        M_pad = _round_up(M, tm)
        if M_pad != M:
            x2d = jnp.pad(x2d, ((0, M_pad - M), (0, 0)))

        # Zero-pad d_ff up to a multiple of tf (padded W2 rows are zero, so
        # padded hidden units contribute nothing).
        d_ff_pad = _round_up(d_ff, tf)
        if d_ff_pad != d_ff:
            pad = d_ff_pad - d_ff
            w1 = jnp.pad(w1, ((0, 0), (0, pad)))
            w2 = jnp.pad(w2, ((0, pad), (0, 0)))
            b1_2d = jnp.pad(b1_2d, ((0, 0), (0, pad)))

        n_row = M_pad // tm
        bytes_acc = int(x2d.size * in_it
                        + n_row * ((w1.size + w2.size) * w_it
                                   + b1_2d.size * b_it)
                        + b2_2d.size * b_it
                        + M_pad * d_model * out_it)

        out = pl.pallas_call(
            _ffn_streamed_kernel,
            out_shape=jax.ShapeDtypeStruct((M_pad, d_model), out_dtype),
            grid_spec=pltpu.PrefetchScalarGridSpec(
                num_scalar_prefetch=0,
                grid=(n_row, d_ff_pad // tf),
                in_specs=[
                    pl.BlockSpec((tm, d_model), lambda i, k: (i, 0)),   # x rows
                    pl.BlockSpec((d_model, tf), lambda i, k: (0, k)),   # W1 slab
                    pl.BlockSpec((1, tf),       lambda i, k: (0, k)),   # b1 slab
                    pl.BlockSpec((tf, d_model), lambda i, k: (k, 0)),   # W2 slab
                    pl.BlockSpec((1, d_model),  lambda i, k: (0, 0)),   # b2
                ],
                out_specs=pl.BlockSpec((tm, d_model), lambda i, k: (i, 0)),
                scratch_shapes=[pltpu.VMEM((tm, d_model), jnp.float32)],
            ),
            compiler_params=pltpu.CompilerParams(
                dimension_semantics=("parallel", "arbitrary"),
                vmem_limit_bytes=budget),
            cost_estimate=pl.CostEstimate(
                flops=flops, transcendentals=0, bytes_accessed=bytes_acc),
        )(x2d, w1, b1_2d, w2, b2_2d)

    if out.shape[0] != M:
        out = out[:M]
    return out.reshape(orig_shape).astype(out_dtype)


# --------------------------------------------------------------------------
# Params / reference
# --------------------------------------------------------------------------
def init_params(key, d_model, d_ff, dtype=jnp.float32):
    """Deterministic init mimicking nn.Linear's uniform(-1/sqrt(fan_in), ...)."""
    k1, k2, k3, k4 = jax.random.split(key, 4)
    lim1 = 1.0 / (d_model ** 0.5)
    lim2 = 1.0 / (d_ff ** 0.5)
    # stored as (d_in, d_out), i.e. transposed relative to torch's (out, in)
    w1 = jax.random.uniform(k1, (d_model, d_ff), dtype, -lim1, lim1)
    b1 = jax.random.uniform(k2, (d_ff,), dtype, -lim1, lim1)
    w2 = jax.random.uniform(k3, (d_ff, d_model), dtype, -lim2, lim2)
    b2 = jax.random.uniform(k4, (d_model,), dtype, -lim2, lim2)
    return w1, b1, w2, b2


def _reference(x, w1, b1, w2, b2):
    return jnp.maximum(x @ w1 + b1, 0.0) @ w2 + b2


if __name__ == "__main__":
    d_model, d_ff = 256, 512
    batch, seq = 2, 8

    key = jax.random.PRNGKey(0)
    kx, kp = jax.random.split(key)
    x = jax.random.normal(kx, (batch, seq, d_model), jnp.float32)
    w1, b1, w2, b2 = init_params(kp, d_model, d_ff)
    ref = _reference(x, w1, b1, w2, b2)

    # 1) Fast path (weights resident), f32.
    y = feed_forward_block(x, w1, b1, w2, b2)
    jax.block_until_ready(y)
    assert y.shape == x.shape
    assert jnp.allclose(y, ref, atol=1e-3, rtol=1e-3)

    # 2) Streamed path (d_ff reduction, 2 k-steps), f32.
    y_s = feed_forward_block(x, w1, b1, w2, b2, force_stream=True, ff_tile=256)
    jax.block_until_ready(y_s)
    assert jnp.allclose(y_s, ref, atol=1e-3, rtol=1e-3)

    # 3) bf16 operands with f32 accumulation (looser tolerance).
    y_bf = feed_forward_block(x, w1, b1, w2, b2, compute_dtype=jnp.bfloat16)
    jax.block_until_ready(y_bf)
    assert jnp.allclose(y_bf, ref, atol=1e-1, rtol=1e-1)

    # 4) Streamed path with non-tile-divisible d_ff (zero-padding of W1/W2/b1).
    w1b, b1b, w2b, b2b = init_params(kp, d_model, 384)
    y_p = feed_forward_block(x, w1b, b1b, w2b, b2b,
                             force_stream=True, ff_tile=256)
    jax.block_until_ready(y_p)
    assert jnp.allclose(y_p, _reference(x, w1b, b1b, w2b, b2b),
                        atol=1e-3, rtol=1e-3)

    # 5) Tail handling: row count (3*5=15) not a multiple of the row tile.
    x2 = jax.random.normal(kx, (3, 5, d_model), jnp.float32)
    y2 = feed_forward_block(x2, w1, b1, w2, b2)
    jax.block_until_ready(y2)
    assert y2.shape == x2.shape
    assert jnp.allclose(y2, _reference(x2, w1, b1, w2, b2),
                        atol=1e-3, rtol=1e-3)

    print("KERNEL_OK")
</pallas_src>

<mosaic_0001>
module attributes {stable_mosaic.version = 11 : i64} {
  func.func @_ffn_resident_kernel(%arg0: i32, %arg1: memref<8x256xf32, #tpu.memory_space<vmem>>, %arg2: memref<256x512xf32, #tpu.memory_space<vmem>>, %arg3: memref<1x512xf32, #tpu.memory_space<vmem>>, %arg4: memref<512x256xf32, #tpu.memory_space<vmem>>, %arg5: memref<1x256xf32, #tpu.memory_space<vmem>>, %arg6: memref<8x256xf32, #tpu.memory_space<vmem>>) attributes {dimension_semantics = [#tpu.dimension_semantics<parallel>], iteration_bounds = array<i64: 2>, scalar_prefetch = 0 : i64, scratch_operands = 0 : i64, tpu.core_type = #tpu.core_type<tc>, window_params = [{transform_indices = @transform_0, window_bounds = array<i64: 8, 256>}, {pipeline_mode = #tpu.pipeline_mode<synchronous>, transform_indices = @transform_1, window_bounds = array<i64: 256, 512>}, {pipeline_mode = #tpu.pipeline_mode<synchronous>, transform_indices = @transform_2, window_bounds = array<i64: 1, 512>}, {pipeline_mode = #tpu.pipeline_mode<synchronous>, transform_indices = @transform_3, window_bounds = array<i64: 512, 256>}, {pipeline_mode = #tpu.pipeline_mode<synchronous>, transform_indices = @transform_4, window_bounds = array<i64: 1, 256>}, {transform_indices = @transform_5, window_bounds = array<i64: 8, 256>}]} {
    %c0 = arith.constant 0 : index
    %c0_0 = arith.constant 0 : index
    %0 = vector.load %arg1[%c0, %c0_0] : memref<8x256xf32, #tpu.memory_space<vmem>>, vector<8x256xf32>
    %c0_1 = arith.constant 0 : index
    %c0_2 = arith.constant 0 : index
    %1 = vector.load %arg2[%c0_1, %c0_2] : memref<256x512xf32, #tpu.memory_space<vmem>>, vector<256x512xf32>
    %cst = arith.constant dense<0.000000e+00> : vector<8x512xf32>
    %2 = tpu.matmul %0, %1, %cst {dimension_numbers = #tpu.dot_dimension_numbers<[1], [0], [0], [1], [0, 0, 1, 1], [], []>} : vector<8x256xf32>, vector<256x512xf32>, vector<8x512xf32> -> vector<8x512xf32>
    %c0_3 = arith.constant 0 : index
    %c0_4 = arith.constant 0 : index
    %3 = vector.load %arg3[%c0_3, %c0_4] : memref<1x512xf32, #tpu.memory_space<vmem>>, vector<1x512xf32>
    %4 = vector.broadcast %3 : vector<1x512xf32> to vector<8x512xf32>
    %5 = arith.addf %2, %4 : vector<8x512xf32>
    %cst_5 = arith.constant 0.000000e+00 : f32
    %6 = vector.broadcast %cst_5 : f32 to vector<8x512xf32>
    %7 = arith.maximumf %5, %6 : vector<8x512xf32>
    %c0_6 = arith.constant 0 : index
    %c0_7 = arith.constant 0 : index
    %8 = vector.load %arg4[%c0_6, %c0_7] : memref<512x256xf32, #tpu.memory_space<vmem>>, vector<512x256xf32>
    %cst_8 = arith.constant dense<0.000000e+00> : vector<8x256xf32>
    %9 = tpu.matmul %7, %8, %cst_8 {dimension_numbers = #tpu.dot_dimension_numbers<[1], [0], [0], [1], [0, 0, 1, 1], [], []>} : vector<8x512xf32>, vector<512x256xf32>, vector<8x256xf32> -> vector<8x256xf32>
    %c0_9 = arith.constant 0 : index
    %c0_10 = arith.constant 0 : index
    %10 = vector.load %arg5[%c0_9, %c0_10] : memref<1x256xf32, #tpu.memory_space<vmem>>, vector<1x256xf32>
    %11 = vector.broadcast %10 : vector<1x256xf32> to vector<8x256xf32>
    %12 = arith.addf %9, %11 : vector<8x256xf32>
    %c0_11 = arith.constant 0 : index
    %c0_12 = arith.constant 0 : index
    %13 = vector.load %arg6[%c0_11, %c0_12] : memref<8x256xf32, #tpu.memory_space<vmem>>, vector<8x256xf32>
    tpu.vector_store %arg6[%c0_11, %c0_12], %12 {strides = array<i32>} : memref<8x256xf32, #tpu.memory_space<vmem>>, vector<8x256xf32>,
    return
  }
  func.func @transform_0(%arg0: i32) -> (i32, i32) {
    %c0_i32 = arith.constant 0 : i32
    %c0_i32_0 = arith.constant 0 : i32
    return %arg0, %c0_i32 : i32, i32
  }
  func.func @transform_1(%arg0: i32) -> (i32, i32) {
    %c0_i32 = arith.constant 0 : i32
    %c0_i32_0 = arith.constant 0 : i32
    %c0_i32_1 = arith.constant 0 : i32
    return %c0_i32, %c0_i32_0 : i32, i32
  }
  func.func @transform_2(%arg0: i32) -> (i32, i32) {
    %c0_i32 = arith.constant 0 : i32
    %c0_i32_0 = arith.constant 0 : i32
    %c0_i32_1 = arith.constant 0 : i32
    return %c0_i32, %c0_i32_0 : i32, i32
  }
  func.func @transform_3(%arg0: i32) -> (i32, i32) {
    %c0_i32 = arith.constant 0 : i32
    %c0_i32_0 = arith.constant 0 : i32
    %c0_i32_1 = arith.constant 0 : i32
    return %c0_i32, %c0_i32_0 : i32, i32
  }
  func.func @transform_4(%arg0: i32) -> (i32, i32) {
    %c0_i32 = arith.constant 0 : i32
    %c0_i32_0 = arith.constant 0 : i32
    %c0_i32_1 = arith.constant 0 : i32
    return %c0_i32, %c0_i32_0 : i32, i32
  }
  func.func @transform_5(%arg0: i32) -> (i32, i32) {
    %c0_i32 = arith.constant 0 : i32
    %c0_i32_0 = arith.constant 0 : i32
    return %arg0, %c0_i32 : i32, i32
  }
}

</mosaic_0001>

<bundles_post_ra>
// kernel: tpu_custom_call.1
= control target key start
LH: loop header
LB: loop body
LE: loop exit
PB: predicated region body
PF: predicated region fallthrough
CT: control target
= control target key end

     0   :  { %10 = vsyncpa [#allocation3], 0  ;;  %s1489_s0 = inlined_call_operand.hbm [shape: f32[16,256], index: 0, kind: input, shape index: {}]   ;;  %s1490_s1 = inlined_call_operand.hbm [shape: f32[256,512], index: 1, kind: input, shape index: {}]   ;;  %s1491_s2 = inlined_call_operand.hbm [shape: f32[1,512], index: 2, kind: input, shape index: {}]   ;;  %s1492_s3 = inlined_call_operand.hbm [shape: f32[512,256], index: 3, kind: input, shape index: {}]   ;;  %s1493_s4 = inlined_call_operand.vmem [shape: f32[1,256], index: 4, kind: input, shape index: {}]   ;;  %s1494_s5 = inlined_call_operand.hbm [shape: f32[16,256], index: 5, kind: output, shape index: {}]  }
   0x1   :  { %12 = vsyncpa [#allocation3 + $0x1], 0 }
   0x2   :  { %13 = vsyncpa [#allocation6], 0 }
   0x3   :  { %14 = vsyncpa [#allocation9], 0 }
   0x4   :  { %15 = vsyncpa [#allocation4], 0 }
   0x5   :  { %17 = vsyncpa [#allocation4 + $0x1], 0  ;;  %s1301_s18 = smov 0   ;;  %s1303_s19 = smov 0  }
   0x6   :  { %s1305_s20 = smov 0   ;;  %s1307_s21 = smov 0  }
   0x7 LB: > { %s1322_s22 = sadd.s32 4294967295, %s1260_s21   ;;  %s979_s23 = sadd.s32 4294967294, %s1260_s21   ;;  %s1260_s21 = sphi %s1307_s21, %s1518_s21   ;;  %s1256_s20 = sphi %s1305_s20, %s1517_s20   ;;  %s1252_s19 = sphi %s1303_s19, %s1516_s19   ;;  %s1248_s18 = sphi %s1301_s18, %s1515_s18  }
   0x8   : > { %p43_p0 = scmp.ne.s32.totalorder %s1252_s19, %s1248_s18  ;;  %p1495_p1 = scmp.eq.s32.totalorder %s1322_s22, 0 }
   0x9   : > { %p157_p3 = scmp.eq.s32.totalorder %s979_s23, 1  ;;  %p980_p5 = scmp.ge.s32.totalorder %s1260_s21, 1 }
   0xa   : > { %p1331_p4 = por %p1495_p1, %p43_p0  ;;  %p164_p7 = scmp.lt.s32.totalorder %s1260_s21, 3 }
   0xb   : > { %p1336_p6 = por %p157_p3, %p43_p0  ;;  %s1262_s27 = smov [#allocation5]  }
   0xc   : > { %s1499_s24 = scalar_select %p1331_p4, 1, 0 }
   0xd   : > { %s1500_s25 = scalar_select %p1336_p6, 1, 0 }
   0xe   : > { %p1341_p8 = pnand %p980_p5, %p164_p7  ;;  %s176_s28 = sshll.u32 %s1262_s27, 4  ;;  %s177_s28 = int_to_ptr.vmem [resolvable:$true] %s176_s28 }
   0xf   : > { %s1263_s30 = smov [#allocation7]   ;;  %s1264_s7 = smov [#allocation8]  }
  0x10   : > { %s1501_s26 = scalar_select %p1341_p8, 1, 0 }
  0x11   : > { %p1017_p9 = pneg %p1341_p8  ;;  %s190_s6 = sshll.u32 %s1263_s30, 4  ;;  %s191_s6 = int_to_ptr.vmem [resolvable:$true] %s190_s6 }
  0x12   : > { %s200_s8 = sshll.u32 %s1264_s7, 4  ;;  %s1093_s9 = scalar_lea.vmem %s177_s28, 16384  ;;  %s201_s8 = int_to_ptr.vmem [resolvable:$true] %s200_s8 }
  0x13   : > { %p1350_p11 = pnand %p1017_p9, %p1495_p1  ;;  %p1094_p13 = scmp.ne.s32.totalorder %s177_s28, %s1093_s9 }
  0x14   : > { %p1101_p5 = scmp.lt.s32.totalorder %s177_s28, %s177_s28  ;;  %p1102_p7 = scmp.lt.s32.totalorder %s1093_s9, %s1093_s9 }
  0x15   : > { %p1084_p12 = pneg %p1350_p11 }
  0x16   : > { %p1103_p9 = por %p1102_p7, %p1101_p5 }
  0x17   : > { %p1096_p0 = pnand %p1094_p13, %p1084_p12 }
  0x19   : > { %p1097_p3 = pneg %p1096_p0 }
  0x1b   : > { %p1104_p10 = pnand %p1103_p9, %p1097_p3 }
  0x1d   : > { %1107 = shalt.err (!%p1104_p10)
}
  0x1e   : > { %s1265_s10 = smov 512   ;;  %s1266_s11 = smov 32  }
  0x1f   : > { %1020 = dma.hbm_to_vmem [thread:$0]  (!%p1350_p11), %s1490_s1, 16384, %s177_s28, [#allocation6], %s1265_s10, %s1265_s10, %s1266_s11  }
  0x20   : > { %s1119_s14 = scalar_lea.vmem %s191_s6, 64  ;;  %p1127_p2 = scmp.lt.s32.totalorder %s191_s6, %s191_s6 }
  0x21   : > { %p1120_p1 = scmp.ne.s32.totalorder %s191_s6, %s1119_s14  ;;  %p1128_p6 = scmp.lt.s32.totalorder %s1119_s14, %s1119_s14 }
  0x23   : > { %p1122_p13 = pnand %p1120_p1, %p1084_p12  ;;  %p1129_p5 = por %p1128_p6, %p1127_p2 }
  0x25   : > { %p1123_p0 = pneg %p1122_p13 }
  0x27   : > { %p1130_p3 = pnand %p1129_p5, %p1123_p0 }
  0x29   : > { %1133 = shalt.err (!%p1130_p3)
}
  0x2a   : > { %1023 = dma.hbm_to_vmem [thread:$0]  (!%p1350_p11), %s1491_s2, 64, %s191_s6, [#allocation6]  }
  0x2b   : > { %s1145_s17 = scalar_lea.vmem %s201_s8, 16384  ;;  %p1153_p9 = scmp.lt.s32.totalorder %s201_s8, %s201_s8 }
  0x2c   : > { %p1146_p10 = scmp.ne.s32.totalorder %s201_s8, %s1145_s17  ;;  %p1154_p13 = scmp.lt.s32.totalorder %s1145_s17, %s1145_s17 }
  0x2e   : > { %p1148_p7 = pnand %p1146_p10, %p1084_p12  ;;  %p1155_p4 = por %p1154_p13, %p1153_p9 }
  0x30   : > { %p1149_p1 = pneg %p1148_p7 }
  0x32   : > { %p1156_p2 = pnand %p1155_p4, %p1149_p1 }
  0x34   : > { %1159 = shalt.err (!%p1156_p2)
}
  0x35   : > { %s1267_s23 = smov 256   ;;  %s1268_s27 = smov 16  }
  0x36   : > { %1026 = dma.hbm_to_vmem [thread:$0]  (!%p1350_p11), %s1492_s3, 16384, %s201_s8, [#allocation9], %s1267_s23, %s1267_s23, %s1268_s27  }
  0x37   : > { %s1381_s6 = sadd.s32 1, %s1260_s21   ;;  %s30_s9 = sadd.s32 1, %s1256_s20 }
  0x38   : > { %s27_s7 = ssub.s32 %s1260_s21, %s1381_s6  ;;  %p37_p6 = scmp.ne.s32.totalorder %s1256_s20, %s1252_s19 }
  0x39   : > { %p28_p4 = scmp.eq.s32.totalorder %s27_s7, 0  ;;  %p38_p12 = scmp.eq.s32.totalorder %s1260_s21, 0 }
  0x3a   : > { %p1038_p0 = scmp.lt.s32.totalorder %s1260_s21, 2  ;;  %p1503_p3 = scmp.eq.s32.totalorder %s1322_s22, 1 }
  0x3b   : > { %s1391_s10 = scalar_select %p28_p4, %s1256_s20, %s30_s9  }
  0x3c   : > { %p39_p5 = por %p38_p12, %p37_p6  ;;  %p1395_p10 = por %p1503_p3, %p37_p6 }
  0x3d   : > { %s217_s29 = sand.u32 1, %s1256_s20   ;;  %s999_s12 = sshll.u32 %s1260_s21, 8 }
  0x3e   : > { %s1504_s11 = scalar_select %p1395_p10, 1, 0 }
  0x3f   : > { %s985_s8 = sshll.u32 %s217_s29, 4  ;;  %s1404_s15 = scalar_lea.hbm %s1489_s0, %s999_s12 }
  0x40   : > { %s221_s16 = scalar_lea.vmem [#allocation2], %s985_s8  ;;  %p1406_p11 = pnand %p1038_p0, %p39_p5 }
  0x41   : > { %s229_s17 = sshll.u32 %s221_s16, 4  ;;  %s218_s27 = scalar_lea.sflag [#allocation3], %s217_s29  ;;  %s230_s17 = int_to_ptr.vmem [resolvable:$true] %s229_s17 }
  0x42   : > { %s1160_s28 = scalar_lea.hbm %s1404_s15, 256  ;;  %p1162_p1 = pneg %p1406_p11 }
  0x43   : > { %p1161_p7 = scmp.ne.s32.totalorder %s1404_s15, %s1160_s28  ;;  %s1165_s9 = scalar_lea.hbm %s1489_s0, 512 }
  0x44   : > { %p1166_p2 = scmp.lt.s32.totalorder %s1404_s15, %s1489_s0  ;;  %p1167_p4 = scmp.lt.s32.totalorder %s1165_s9, %s1160_s28 }
  0x45   : > { %p1163_p9 = pnand %p1162_p1, %p1161_p7 }
  0x46   : > { %p1168_p6 = por %p1167_p4, %p1166_p2 }
  0x47   : > { %p1164_p13 = pneg %p1163_p9 }
  0x49   : > { %p1169_p12 = pnand %p1168_p6, %p1164_p13 }
  0x4b   : > { %1172 = shalt.err (!%p1169_p12)
}
  0x4c   : > { %s1173_s13 = scalar_lea.vmem %s230_s17, 256  ;;  %s1269_s29 = smov [#allocation2]  }
  0x4d   : > { %p1174_p0 = scmp.ne.s32.totalorder %s230_s17, %s1173_s13  ;;  %s1178_s14 = sshll.u32 %s1269_s29, 4  ;;  %s1179_s14 = int_to_ptr.vmem [resolvable:$false] %s1178_s14 }
  0x4e   : > { %s1180_s16 = scalar_lea.vmem %s1179_s14, 512  ;;  %p1181_p7 = scmp.lt.s32.totalorder %s230_s17, %s1179_s14 }
  0x4f   : > { %p1176_p5 = pnand %p1174_p0, %p1162_p1  ;;  %p1182_p9 = scmp.lt.s32.totalorder %s1180_s16, %s1173_s13 }
  0x51   : > { %p1177_p3 = pneg %p1176_p5  ;;  %p1183_p10 = por %p1182_p9, %p1181_p7 }
  0x53   : > { %p1184_p8 = pnand %p1183_p10, %p1177_p3 }
  0x55   : > { %1187 = shalt.err (!%p1184_p8)
}
  0x56   : > { %1030 = dma.hbm_to_vmem [thread:$0]  (!%p1406_p11), %s1404_s15, 256, %s230_s17, %s218_s27  }
  0x57   : > { %p1506_p13 = scmp.ne.s32.totalorder %s1501_s26, 0 }
  0x58   : > { %s1427_s28 = sand.u32 (!%p1506_p13), 1, %s1252_s19   ;;  %p1507_p8 = scmp.ne.s32.totalorder (!%p1506_p13), %s1499_s24, 0 }
  0x59   : > { %238 = sbr.rel (%p1506_p13) target bundleno = 579 (0x243), region = 40  ;;  %s989_s30 = sshll.u32 (!%p1506_p13), %s1427_s28, 4 }
  0x5a   : > { %s241_s7 = scalar_lea.sflag (!%p1506_p13), [#allocation3], %s1427_s28  ;;  %s1433_s9 = scalar_lea.vmem (!%p1506_p13), [#allocation2], %s989_s30 }
  0x5e   : > { %1231 = dma.done.wait (%p1507_p8), %s241_s7, 256  }
  0x5f   : > { %1233 = vsyncadd (%p1507_p8), %s241_s7, 4294967040  ;;  %p1508_p10 = scmp.eq.s32.totalorder %s1322_s22, 0 }
  0x61   : > { %1235 = dma.done.wait (%p1508_p10), [#allocation6], 16448   ;;  %p1509_p11 = pmov %p1508_p10 }
  0x62   : > { %p1510_p1 = pmov %p1508_p10 }
  0x63   : > { %1237 = vsyncadd (%p1509_p11), [#allocation6], 4294950848 }
  0x64   : > { %1239 = dma.done.wait (%p1510_p1), [#allocation9], 16384   ;;  %p1511_p2 = pmov %p1510_p1 }
  0x65   : > { %v346_v0 = vld [vmem:[#allocation5 + $0x1e8] sm:$0xff]  ;;  %v348_v1 = vld [vmem:[#allocation5 + $0x1f8] sm:$0xff]  ;;  %v345_v2 = vld [vmem:[#allocation5 + $0x1e0] sm:$0xff]  ;;  %s1000_s15 = sshll.u32 %s1322_s22, 8  ;;  %s282_s17 = scalar_lea.vmem [#allocation10], %s989_s30 }
  0x66   : > { %1241 = vsyncadd (%p1511_p2), [#allocation9], 4294950912  ;;  %435 = vmatprep.subr.mxu0 %v346_v0  ;;  %506 = vmatprep.subr.mxu1 %v348_v1  ;;  %v347_v3 = vld [vmem:[#allocation5 + $0x1f0] sm:$0xff]  ;;  %v342_v4 = vld [vmem:[#allocation5 + $0x1c8] sm:$0xff]  ;;  %s880_s23 = sshll.u32 %s282_s17, 4  ;;  %s878_s8 = scalar_lea.hbm %s1494_s5, %s1000_s15  ;;  %s881_s23 = int_to_ptr.vmem [resolvable:$true] %s880_s23 }
  0x67   : > { %v344_v5 = vld [vmem:[#allocation5 + $0x1d8] sm:$0xff]  ;;  %436 = vmatpush1.msra.mxu0 %v345_v2  ;;  %507 = vmatpush1.msra.mxu1 %v347_v3  ;;  %v341_v6 = vld [vmem:[#allocation5 + $0x1c0] sm:$0xff]  ;;  %v343_v7 = vld [vmem:[#allocation5 + $0x1d0] sm:$0xff]  ;;  %s866_s13 = scalar_lea.sflag [#allocation4], %s1427_s28  ;;  %s1188_s29 = scalar_lea.vmem %s881_s23, 256 }
  0x68   : > { %v338_v8 = vld [vmem:[#allocation5 + $0x1a8] sm:$0xff]  ;;  %437 = vmatprep.subr.mxu0 %v342_v4  ;;  %508 = vmatprep.subr.mxu1 %v344_v5  ;;  %v340_v9 = vld [vmem:[#allocation5 + $0x1b8] sm:$0xff]  ;;  %v337_v10 = vld [vmem:[#allocation5 + $0x1a0] sm:$0xff]  ;;  %p1189_p4 = scmp.ne.s32.totalorder %s881_s23, %s1188_s29  ;;  %p1512_p6 = scmp.ne.s32.totalorder %s1504_s11, 0 }
  0x69   : > { %v339_v11 = vld [vmem:[#allocation5 + $0x1b0] sm:$0xff]  ;;  %438 = vmatpush1.msra.mxu0 %v341_v6  ;;  %509 = vmatpush1.msra.mxu1 %v343_v7  ;;  %v334_v12 = vld [vmem:[#allocation5 + $0x188] sm:$0xff]  ;;  %v336_v13 = vld [vmem:[#allocation5 + $0x198] sm:$0xff]  ;;  %s1270_s22 = smov [#allocation10]  }
  0x6a   : > { %439 = vmatprep.subr.mxu0 %v338_v8  ;;  %510 = vmatprep.subr.mxu1 %v340_v9  ;;  %v333_v14 = vld [vmem:[#allocation5 + $0x180] sm:$0xff]  ;;  %v335_v15 = vld [vmem:[#allocation5 + $0x190] sm:$0xff]  ;;  %v330_v16 = vld [vmem:[#allocation5 + $0x168] sm:$0xff]  ;;  %p1190_p12 = pnand %p1189_p4, %p1512_p6  ;;  %s1192_s14 = sshll.u32 %s1270_s22, 4  ;;  %s1193_s14 = int_to_ptr.vmem [resolvable:$false] %s1192_s14 }
  0x6b   : > { %440 = vmatpush1.msra.mxu0 %v337_v10  ;;  %511 = vmatpush1.msra.mxu1 %v339_v11  ;;  %v332_v17 = vld [vmem:[#allocation5 + $0x178] sm:$0xff]  ;;  %v329_v18 = vld [vmem:[#allocation5 + $0x160] sm:$0xff]  ;;  %v331_v19 = vld [vmem:[#allocation5 + $0x170] sm:$0xff]  ;;  %s1194_s16 = scalar_lea.vmem %s1193_s14, 512  ;;  %p1195_p5 = scmp.lt.s32.totalorder %s881_s23, %s1193_s14 }
  0x6c   : > { %441 = vmatprep.subr.mxu0 %v334_v12  ;;  %512 = vmatprep.subr.mxu1 %v336_v13  ;;  %v326_v20 = vld [vmem:[#allocation5 + $0x148] sm:$0xff]  ;;  %v328_v21 = vld [vmem:[#allocation5 + $0x158] sm:$0xff]  ;;  %v325_v22 = vld [vmem:[#allocation5 + $0x140] sm:$0xff]  ;;  %p1191_p0 = pneg %p1190_p12  ;;  %p1196_p3 = scmp.lt.s32.totalorder %s1194_s16, %s1188_s29 }
  0x6d   : > { %442 = vmatpush1.msra.mxu0 %v333_v14  ;;  %513 = vmatpush1.msra.mxu1 %v335_v15  ;;  %v327_v23 = vld [vmem:[#allocation5 + $0x150] sm:$0xff]  ;;  %v322_v24 = vld [vmem:[#allocation5 + $0x128] sm:$0xff]  ;;  %v324_v25 = vld [vmem:[#allocation5 + $0x138] sm:$0xff] }
  0x6e   : > { %443 = vmatprep.subr.mxu0 %v330_v16  ;;  %514 = vmatprep.subr.mxu1 %v332_v17  ;;  %v321_v26 = vld [vmem:[#allocation5 + $0x120] sm:$0xff]  ;;  %v323_v27 = vld [vmem:[#allocation5 + $0x130] sm:$0xff]  ;;  %v318_v28 = vld [vmem:[#allocation5 + $0x108] sm:$0xff]  ;;  %p1197_p7 = por %p1196_p3, %p1195_p5 }
  0x6f   : > { %444 = vmatpush1.msra.mxu0 %v329_v18  ;;  %515 = vmatpush1.msra.mxu1 %v331_v19  ;;  %v320_v29 = vld [vmem:[#allocation5 + $0x118] sm:$0xff]  ;;  %v317_v30 = vld [vmem:[#allocation5 + $0x100] sm:$0xff]  ;;  %v319_v31 = vld [vmem:[#allocation5 + $0x110] sm:$0xff] }
  0x70   : > { %445 = vmatprep.subr.mxu0 %v326_v20  ;;  %516 = vmatprep.subr.mxu1 %v328_v21  ;;  %v314_v32 = vld [vmem:[#allocation5 + $0xe8] sm:$0xff]  ;;  %v316_v33 = vld [vmem:[#allocation5 + $0xf8] sm:$0xff]  ;;  %v313_v34 = vld [vmem:[#allocation5 + $0xe0] sm:$0xff]  ;;  %p1198_p9 = pnand %p1197_p7, %p1191_p0 }
  0x71   : > { %446 = vmatpush1.msra.mxu0 %v325_v22  ;;  %517 = vmatpush1.msra.mxu1 %v327_v23  ;;  %v315_v35 = vld [vmem:[#allocation5 + $0xf0] sm:$0xff]  ;;  %v310_v36 = vld [vmem:[#allocation5 + $0xc8] sm:$0xff]  ;;  %v312_v37 = vld [vmem:[#allocation5 + $0xd8] sm:$0xff] }
  0x72   : > { %447 = vmatprep.subr.mxu0 %v322_v24  ;;  %518 = vmatprep.subr.mxu1 %v324_v25  ;;  %v309_v38 = vld [vmem:[#allocation5 + $0xc0] sm:$0xff]  ;;  %v311_v39 = vld [vmem:[#allocation5 + $0xd0] sm:$0xff]  ;;  %v306_v40 = vld [vmem:[#allocation5 + $0xa8] sm:$0xff] }
  0x73   : > { %448 = vmatpush1.msra.mxu0 %v321_v26  ;;  %519 = vmatpush1.msra.mxu1 %v323_v27  ;;  %v308_v41 = vld [vmem:[#allocation5 + $0xb8] sm:$0xff]  ;;  %v305_v42 = vld [vmem:[#allocation5 + $0xa0] sm:$0xff]  ;;  %v307_v43 = vld [vmem:[#allocation5 + $0xb0] sm:$0xff] }
  0x74   : > { %449 = vmatprep.subr.mxu0 %v318_v28  ;;  %520 = vmatprep.subr.mxu1 %v320_v29  ;;  %v302_v44 = vld [vmem:[#allocation5 + $0x88] sm:$0xff]  ;;  %v304_v45 = vld [vmem:[#allocation5 + $0x98] sm:$0xff]  ;;  %v301_v46 = vld [vmem:[#allocation5 + $0x80] sm:$0xff] }
  0x75   : > { %450 = vmatpush1.msra.mxu0 %v317_v30  ;;  %521 = vmatpush1.msra.mxu1 %v319_v31  ;;  %v303_v47 = vld [vmem:[#allocation5 + $0x90] sm:$0xff]  ;;  %v298_v48 = vld [vmem:[#allocation5 + $0x68] sm:$0xff]  ;;  %v300_v49 = vld [vmem:[#allocation5 + $0x78] sm:$0xff] }
  0x76   : > { %451 = vmatprep.subr.mxu0 %v314_v32  ;;  %522 = vmatprep.subr.mxu1 %v316_v33  ;;  %v297_v50 = vld [vmem:[#allocation5 + $0x60] sm:$0xff]  ;;  %v299_v51 = vld [vmem:[#allocation5 + $0x70] sm:$0xff]  ;;  %v294_v52 = vld [vmem:[#allocation5 + $0x48] sm:$0xff] }
  0x77   : > { %452 = vmatpush1.msra.mxu0 %v313_v34  ;;  %523 = vmatpush1.msra.mxu1 %v315_v35  ;;  %v296_v53 = vld [vmem:[#allocation5 + $0x58] sm:$0xff]  ;;  %v293_v54 = vld [vmem:[#allocation5 + $0x40] sm:$0xff]  ;;  %v295_v55 = vld [vmem:[#allocation5 + $0x50] sm:$0xff] }
  0x78   : > { %453 = vmatprep.subr.mxu0 %v310_v36  ;;  %524 = vmatprep.subr.mxu1 %v312_v37  ;;  %v290_v56 = vld [vmem:[#allocation5 + $0x28] sm:$0xff]  ;;  %v292_v57 = vld [vmem:[#allocation5 + $0x38] sm:$0xff]  ;;  %v289_v58 = vld [vmem:[#allocation5 + $0x20] sm:$0xff] }
  0x79   : > { %454 = vmatpush1.msra.mxu0 %v309_v38  ;;  %525 = vmatpush1.msra.mxu1 %v311_v39  ;;  %v291_v59 = vld [vmem:[#allocation5 + $0x30] sm:$0xff]  ;;  %v286_v60 = vld [vmem:[#allocation5 + $0x8] sm:$0xff]  ;;  %v288_v61 = vld [vmem:[#allocation5 + $0x18] sm:$0xff] }
  0x7a   : > { %455 = vmatprep.subr.mxu0 %v306_v40  ;;  %526 = vmatprep.subr.mxu1 %v308_v41  ;;  %v285_v62 = vld [vmem:[#allocation5] sm:$0xff]  ;;  %v287_v63 = vld [vmem:[#allocation5 + $0x10] sm:$0xff]  ;;  %v410_v0 = vld [vmem:[#allocation5 + $0x3e8] sm:$0xff] }
  0x7b   : > { %456 = vmatpush1.msra.mxu0 %v305_v42  ;;  %527 = vmatpush1.msra.mxu1 %v307_v43  ;;  %v412_v1 = vld [vmem:[#allocation5 + $0x3f8] sm:$0xff]  ;;  %v409_v2 = vld [vmem:[#allocation5 + $0x3e0] sm:$0xff]  ;;  %v411_v3 = vld [vmem:[#allocation5 + $0x3f0] sm:$0xff] }
  0x7c   : > { %457 = vmatprep.subr.mxu0 %v302_v44  ;;  %528 = vmatprep.subr.mxu1 %v304_v45  ;;  %v406_v4 = vld [vmem:[#allocation5 + $0x3c8] sm:$0xff]  ;;  %v408_v5 = vld [vmem:[#allocation5 + $0x3d8] sm:$0xff]  ;;  %v405_v6 = vld [vmem:[#allocation5 + $0x3c0] sm:$0xff] }
  0x7d   : > { %458 = vmatpush1.msra.mxu0 %v301_v46  ;;  %529 = vmatpush1.msra.mxu1 %v303_v47  ;;  %v407_v7 = vld [vmem:[#allocation5 + $0x3d0] sm:$0xff]  ;;  %v402_v8 = vld [vmem:[#allocation5 + $0x3a8] sm:$0xff]  ;;  %v404_v9 = vld [vmem:[#allocation5 + $0x3b8] sm:$0xff] }
  0x7e   : > { %459 = vmatprep.subr.mxu0 %v298_v48  ;;  %530 = vmatprep.subr.mxu1 %v300_v49  ;;  %v401_v10 = vld [vmem:[#allocation5 + $0x3a0] sm:$0xff]  ;;  %v403_v11 = vld [vmem:[#allocation5 + $0x3b0] sm:$0xff]  ;;  %v398_v12 = vld [vmem:[#allocation5 + $0x388] sm:$0xff] }
  0x7f   : > { %460 = vmatpush1.msra.mxu0 %v297_v50  ;;  %531 = vmatpush1.msra.mxu1 %v299_v51  ;;  %v400_v13 = vld [vmem:[#allocation5 + $0x398] sm:$0xff]  ;;  %v397_v14 = vld [vmem:[#allocation5 + $0x380] sm:$0xff]  ;;  %v399_v15 = vld [vmem:[#allocation5 + $0x390] sm:$0xff] }
  0x80   : > { %461 = vmatprep.subr.mxu0 %v294_v52  ;;  %532 = vmatprep.subr.mxu1 %v296_v53  ;;  %v394_v16 = vld [vmem:[#allocation5 + $0x368] sm:$0xff]  ;;  %v396_v17 = vld [vmem:[#allocation5 + $0x378] sm:$0xff]  ;;  %v393_v18 = vld [vmem:[#allocation5 + $0x360] sm:$0xff] }
  0x81   : > { %462 = vmatpush1.msra.mxu0 %v293_v54  ;;  %533 = vmatpush1.msra.mxu1 %v295_v55  ;;  %v395_v19 = vld [vmem:[#allocation5 + $0x370] sm:$0xff]  ;;  %v390_v20 = vld [vmem:[#allocation5 + $0x348] sm:$0xff]  ;;  %v392_v21 = vld [vmem:[#allocation5 + $0x358] sm:$0xff] }
  0x82   : > { %463 = vmatprep.subr.mxu0 %v290_v56  ;;  %534 = vmatprep.subr.mxu1 %v292_v57  ;;  %v389_v22 = vld [vmem:[#allocation5 + $0x340] sm:$0xff]  ;;  %v391_v23 = vld [vmem:[#allocation5 + $0x350] sm:$0xff]  ;;  %v386_v24 = vld [vmem:[#allocation5 + $0x328] sm:$0xff] }
  0x83   : > { %464 = vmatpush1.msra.mxu0 %v289_v58  ;;  %535 = vmatpush1.msra.mxu1 %v291_v59  ;;  %v388_v25 = vld [vmem:[#allocation5 + $0x338] sm:$0xff]  ;;  %v385_v26 = vld [vmem:[#allocation5 + $0x320] sm:$0xff]  ;;  %v387_v27 = vld [vmem:[#allocation5 + $0x330] sm:$0xff] }
  0x84   : > { %465 = vmatprep.subr.mxu0 %v286_v60  ;;  %536 = vmatprep.subr.mxu1 %v288_v61  ;;  %v382_v28 = vld [vmem:[#allocation5 + $0x308] sm:$0xff]  ;;  %v384_v29 = vld [vmem:[#allocation5 + $0x318] sm:$0xff]  ;;  %v381_v30 = vld [vmem:[#allocation5 + $0x300] sm:$0xff] }
  0x85   : > { %466 = vmatpush1.msra.mxu0 %v285_v62  ;;  %537 = vmatpush1.msra.mxu1 %v287_v63  ;;  %v383_v31 = vld [vmem:[#allocation5 + $0x310] sm:$0xff]  ;;  %v378_v32 = vld [vmem:[#allocation5 + $0x2e8] sm:$0xff]  ;;  %v380_v33 = vld [vmem:[#allocation5 + $0x2f8] sm:$0xff] }
  0x86   : > { %467 = vmatprep.subr.mxu0 %v410_v0  ;;  %538 = vmatprep.subr.mxu1 %v412_v1  ;;  %v377_v34 = vld [vmem:[#allocation5 + $0x2e0] sm:$0xff]  ;;  %v379_v35 = vld [vmem:[#allocation5 + $0x2f0] sm:$0xff]  ;;  %v374_v36 = vld [vmem:[#allocation5 + $0x2c8] sm:$0xff] }
  0x87   : > { %468 = vmatpush2.msra.mxu0 %v409_v2  ;;  %539 = vmatpush2.msra.mxu1 %v411_v3  ;;  %v376_v37 = vld [vmem:[#allocation5 + $0x2d8] sm:$0xff]  ;;  %v373_v38 = vld [vmem:[#allocation5 + $0x2c0] sm:$0xff]  ;;  %v375_v39 = vld [vmem:[#allocation5 + $0x2d0] sm:$0xff] }
  0x88   : > { %469 = vmatprep.subr.mxu0 %v406_v4  ;;  %540 = vmatprep.subr.mxu1 %v408_v5  ;;  %v370_v40 = vld [vmem:[#allocation5 + $0x2a8] sm:$0xff]  ;;  %v372_v41 = vld [vmem:[#allocation5 + $0x2b8] sm:$0xff]  ;;  %v369_v42 = vld [vmem:[#allocation5 + $0x2a0] sm:$0xff] }
  0x89   : > { %470 = vmatpush2.msra.mxu0 %v405_v6  ;;  %541 = vmatpush2.msra.mxu1 %v407_v7  ;;  %v371_v43 = vld [vmem:[#allocation5 + $0x2b0] sm:$0xff]  ;;  %v366_v44 = vld [vmem:[#allocation5 + $0x288] sm:$0xff]  ;;  %v368_v45 = vld [vmem:[#allocation5 + $0x298] sm:$0xff] }
  0x8a   : > { %471 = vmatprep.subr.mxu0 %v402_v8  ;;  %542 = vmatprep.subr.mxu1 %v404_v9  ;;  %v365_v46 = vld [vmem:[#allocation5 + $0x280] sm:$0xff]  ;;  %v367_v47 = vld [vmem:[#allocation5 + $0x290] sm:$0xff]  ;;  %v362_v48 = vld [vmem:[#allocation5 + $0x268] sm:$0xff] }
  0x8b   : > { %472 = vmatpush2.msra.mxu0 %v401_v10  ;;  %543 = vmatpush2.msra.mxu1 %v403_v11  ;;  %v364_v49 = vld [vmem:[#allocation5 + $0x278] sm:$0xff]  ;;  %v361_v50 = vld [vmem:[#allocation5 + $0x260] sm:$0xff]  ;;  %v363_v51 = vld [vmem:[#allocation5 + $0x270] sm:$0xff] }
  0x8c   : > { %473 = vmatprep.subr.mxu0 %v398_v12  ;;  %544 = vmatprep.subr.mxu1 %v400_v13  ;;  %v358_v52 = vld [vmem:[#allocation5 + $0x248] sm:$0xff]  ;;  %v360_v53 = vld [vmem:[#allocation5 + $0x258] sm:$0xff]  ;;  %v357_v54 = vld [vmem:[#allocation5 + $0x240] sm:$0xff] }
  0x8d   : > { %474 = vmatpush2.msra.mxu0 %v397_v14  ;;  %545 = vmatpush2.msra.mxu1 %v399_v15  ;;  %v359_v55 = vld [vmem:[#allocation5 + $0x250] sm:$0xff]  ;;  %v354_v56 = vld [vmem:[#allocation5 + $0x228] sm:$0xff]  ;;  %v356_v57 = vld [vmem:[#allocation5 + $0x238] sm:$0xff] }
  0x8e   : > { %475 = vmatprep.subr.mxu0 %v394_v16  ;;  %546 = vmatprep.subr.mxu1 %v396_v17  ;;  %v353_v58 = vld [vmem:[#allocation5 + $0x220] sm:$0xff]  ;;  %v355_v59 = vld [vmem:[#allocation5 + $0x230] sm:$0xff]  ;;  %v350_v60 = vld [vmem:[#allocation5 + $0x208] sm:$0xff] }
  0x8f   : > { %476 = vmatpush2.msra.mxu0 %v393_v18  ;;  %547 = vmatpush2.msra.mxu1 %v395_v19  ;;  %v352_v61 = vld [vmem:[#allocation5 + $0x218] sm:$0xff]  ;;  %v349_v62 = vld [vmem:[#allocation5 + $0x200] sm:$0xff]  ;;  %v351_v0 = vld [vmem:[#allocation5 + $0x210] sm:$0xff] }
  0x90   : > { %477 = vmatprep.subr.mxu0 %v390_v20  ;;  %548 = vmatprep.subr.mxu1 %v392_v21  ;;  %v284_v63 = vld [vmem:[%s1433_s9 + $0x8] sm:$0xff]  ;;  %v283_v1 = vld [vmem:[%s1433_s9] sm:$0xff] }
  0x91   : > { %478 = vmatpush2.msra.mxu0 %v389_v22  ;;  %549 = vmatpush2.msra.mxu1 %v391_v23  ;;  %v612_v2 = vld [vmem:[#allocation8 + $0xf8] sm:$0xff]  ;;  %v611_v4 = vld [vmem:[#allocation8 + $0xf0] sm:$0xff]  ;;  %v610_v6 = vld [vmem:[#allocation8 + $0xe8] sm:$0xff] }
  0x92   : > { %479 = vmatprep.subr.mxu0 %v386_v24  ;;  %550 = vmatprep.subr.mxu1 %v388_v25  ;;  %v676_v3 = vld [vmem:[#allocation8 + $0x2f8] sm:$0xff]  ;;  %v675_v5 = vld [vmem:[#allocation8 + $0x2f0] sm:$0xff]  ;;  %v674_v7 = vld [vmem:[#allocation8 + $0x2e8] sm:$0xff] }
  0x93   : > { %480 = vmatpush2.msra.mxu0 %v385_v26  ;;  %551 = vmatpush2.msra.mxu1 %v387_v27  ;;  %v609_v8 = vld [vmem:[#allocation8 + $0xe0] sm:$0xff]  ;;  %v608_v10 = vld [vmem:[#allocation8 + $0xd8] sm:$0xff]  ;;  %v607_v12 = vld [vmem:[#allocation8 + $0xd0] sm:$0xff] }
  0x94   : > { %481 = vmatprep.subr.mxu0 %v382_v28  ;;  %552 = vmatprep.subr.mxu1 %v384_v29  ;;  %v673_v9 = vld [vmem:[#allocation8 + $0x2e0] sm:$0xff]  ;;  %v672_v11 = vld [vmem:[#allocation8 + $0x2d8] sm:$0xff]  ;;  %v671_v13 = vld [vmem:[#allocation8 + $0x2d0] sm:$0xff] }
  0x95   : > { %482 = vmatpush2.msra.mxu0 %v381_v30  ;;  %553 = vmatpush2.msra.mxu1 %v383_v31  ;;  %v606_v14 = vld [vmem:[#allocation8 + $0xc8] sm:$0xff]  ;;  %v605_v16 = vld [vmem:[#allocation8 + $0xc0] sm:$0xff]  ;;  %v604_v18 = vld [vmem:[#allocation8 + $0xb8] sm:$0xff] }
  0x96   : > { %483 = vmatprep.subr.mxu0 %v378_v32  ;;  %554 = vmatprep.subr.mxu1 %v380_v33  ;;  %v670_v15 = vld [vmem:[#allocation8 + $0x2c8] sm:$0xff]  ;;  %v669_v17 = vld [vmem:[#allocation8 + $0x2c0] sm:$0xff]  ;;  %v668_v19 = vld [vmem:[#allocation8 + $0x2b8] sm:$0xff] }
  0x97   : > { %484 = vmatpush2.msra.mxu0 %v377_v34  ;;  %555 = vmatpush2.msra.mxu1 %v379_v35  ;;  %v603_v20 = vld [vmem:[#allocation8 + $0xb0] sm:$0xff]  ;;  %v602_v22 = vld [vmem:[#allocation8 + $0xa8] sm:$0xff]  ;;  %v601_v24 = vld [vmem:[#allocation8 + $0xa0] sm:$0xff] }
  0x98   : > { %485 = vmatprep.subr.mxu0 %v374_v36  ;;  %556 = vmatprep.subr.mxu1 %v376_v37  ;;  %v667_v21 = vld [vmem:[#allocation8 + $0x2b0] sm:$0xff]  ;;  %v666_v23 = vld [vmem:[#allocation8 + $0x2a8] sm:$0xff]  ;;  %v665_v25 = vld [vmem:[#allocation8 + $0x2a0] sm:$0xff] }
  0x99   : > { %486 = vmatpush2.msra.mxu0 %v373_v38  ;;  %557 = vmatpush2.msra.mxu1 %v375_v39  ;;  %v600_v26 = vld [vmem:[#allocation8 + $0x98] sm:$0xff]  ;;  %v599_v28 = vld [vmem:[#allocation8 + $0x90] sm:$0xff]  ;;  %v598_v30 = vld [vmem:[#allocation8 + $0x88] sm:$0xff] }
  0x9a   : > { %487 = vmatprep.subr.mxu0 %v370_v40  ;;  %558 = vmatprep.subr.mxu1 %v372_v41  ;;  %v664_v27 = vld [vmem:[#allocation8 + $0x298] sm:$0xff]  ;;  %v663_v29 = vld [vmem:[#allocation8 + $0x290] sm:$0xff]  ;;  %v662_v31 = vld [vmem:[#allocation8 + $0x288] sm:$0xff] }
  0x9b   : > { %488 = vmatpush2.msra.mxu0 %v369_v42  ;;  %559 = vmatpush2.msra.mxu1 %v371_v43  ;;  %v597_v32 = vld [vmem:[#allocation8 + $0x80] sm:$0xff]  ;;  %v596_v34 = vld [vmem:[#allocation8 + $0x78] sm:$0xff]  ;;  %v595_v36 = vld [vmem:[#allocation8 + $0x70] sm:$0xff] }
  0x9c   : > { %489 = vmatprep.subr.mxu0 %v366_v44  ;;  %560 = vmatprep.subr.mxu1 %v368_v45  ;;  %v661_v33 = vld [vmem:[#allocation8 + $0x280] sm:$0xff]  ;;  %v660_v35 = vld [vmem:[#allocation8 + $0x278] sm:$0xff]  ;;  %v659_v37 = vld [vmem:[#allocation8 + $0x270] sm:$0xff] }
  0x9d   : > { %490 = vmatpush2.msra.mxu0 %v365_v46  ;;  %561 = vmatpush2.msra.mxu1 %v367_v47  ;;  %v594_v38 = vld [vmem:[#allocation8 + $0x68] sm:$0xff]  ;;  %v593_v40 = vld [vmem:[#allocation8 + $0x60] sm:$0xff]  ;;  %v592_v42 = vld [vmem:[#allocation8 + $0x58] sm:$0xff] }
  0x9e   : > { %491 = vmatprep.subr.mxu0 %v362_v48  ;;  %562 = vmatprep.subr.mxu1 %v364_v49  ;;  %v658_v39 = vld [vmem:[#allocation8 + $0x268] sm:$0xff]  ;;  %v657_v41 = vld [vmem:[#allocation8 + $0x260] sm:$0xff]  ;;  %v656_v43 = vld [vmem:[#allocation8 + $0x258] sm:$0xff] }
  0x9f   : > { %492 = vmatpush2.msra.mxu0 %v361_v50  ;;  %563 = vmatpush2.msra.mxu1 %v363_v51  ;;  %v591_v44 = vld [vmem:[#allocation8 + $0x50] sm:$0xff]  ;;  %v590_v46 = vld [vmem:[#allocation8 + $0x48] sm:$0xff]  ;;  %v589_v48 = vld [vmem:[#allocation8 + $0x40] sm:$0xff] }
  0xa0   : > { %493 = vmatprep.subr.mxu0 %v358_v52  ;;  %564 = vmatprep.subr.mxu1 %v360_v53  ;;  %v655_v45 = vld [vmem:[#allocation8 + $0x250] sm:$0xff]  ;;  %v654_v47 = vld [vmem:[#allocation8 + $0x248] sm:$0xff]  ;;  %v653_v49 = vld [vmem:[#allocation8 + $0x240] sm:$0xff] }
  0xa1   : > { %494 = vmatpush2.msra.mxu0 %v357_v54  ;;  %565 = vmatpush2.msra.mxu1 %v359_v55  ;;  %v588_v50 = vld [vmem:[#allocation8 + $0x38] sm:$0xff]  ;;  %v587_v52 = vld [vmem:[#allocation8 + $0x30] sm:$0xff]  ;;  %v586_v54 = vld [vmem:[#allocation8 + $0x28] sm:$0xff] }
  0xa2   : > { %495 = vmatprep.subr.mxu0 %v354_v56  ;;  %566 = vmatprep.subr.mxu1 %v356_v57  ;;  %v652_v51 = vld [vmem:[#allocation8 + $0x238] sm:$0xff]  ;;  %v651_v53 = vld [vmem:[#allocation8 + $0x230] sm:$0xff]  ;;  %v650_v55 = vld [vmem:[#allocation8 + $0x228] sm:$0xff] }
  0xa3   : > { %496 = vmatpush2.msra.mxu0 %v353_v58  ;;  %567 = vmatpush2.msra.mxu1 %v355_v59  ;;  %v585_v56 = vld [vmem:[#allocation8 + $0x20] sm:$0xff]  ;;  %v584_v58 = vld [vmem:[#allocation8 + $0x18] sm:$0xff] }
  0xa4   : > { %497 = vmatprep.subr.mxu0 %v350_v60  ;;  %568 = vmatprep.subr.mxu1 %v352_v61  ;;  %v649_v57 = vld [vmem:[#allocation8 + $0x220] sm:$0xff]  ;;  %v648_v59 = vld [vmem:[#allocation8 + $0x218] sm:$0xff]  ;;  %v583_v60 = vld [vmem:[#allocation8 + $0x10] sm:$0xff] }
  0xa5   : > { %498 = vmatpush2.msra.mxu0 %v349_v62  ;;  %499 = vmatprep.mubr.f32.mxu0 %v284_v63  ;;  %v647_v61 = vld [vmem:[#allocation8 + $0x210] sm:$0xff]  ;;  %v582_v62 = vld [vmem:[#allocation8 + $0x8] sm:$0xff] }
  0xa6   : > { %569 = vmatpush2.msra.mxu1 %v351_v0  ;;  %570 = vmatprep.mubr.f32.mxu1 %v284_v63  ;;  %v646_v63 = vld [vmem:[#allocation8 + $0x208] sm:$0xff]  ;;  %v581_v0 = vld [vmem:[#allocation8] sm:$0xff] }
  0xa7   : > { %500 = vmatmul.mubr.f32.vlgmr.msra.gmra.mxu0 %v283_v1  ;;  %571 = vmatmul.mubr.f32.vlgmr.msra.gmra.mxu1 %v283_v1  ;;  %v645_v1 = vld [vmem:[#allocation8 + $0x200] sm:$0xff] }
  0xa8   : > { %721 = vmatprep.subr.mxu0 %v612_v2  ;;  %792 = vmatprep.subr.mxu1 %v676_v3  ;;  %v644_v2 = vld [vmem:[#allocation8 + $0x1f8] sm:$0xff] }
  0xa9   : > { %722 = vmatpush1.msra.mxu0 %v611_v4  ;;  %793 = vmatpush1.msra.mxu1 %v675_v5  ;;  %v708_v3 = vld [vmem:[#allocation8 + $0x3f8] sm:$0xff]  ;;  %v643_v4 = vld [vmem:[#allocation8 + $0x1f0] sm:$0xff] }
  0xaa   : > { %723 = vmatprep.subr.mxu0 %v610_v6  ;;  %794 = vmatprep.subr.mxu1 %v674_v7  ;;  %v707_v5 = vld [vmem:[#allocation8 + $0x3f0] sm:$0xff]  ;;  %v642_v6 = vld [vmem:[#allocation8 + $0x1e8] sm:$0xff] }
  0xab   : > { %724 = vmatpush1.msra.mxu0 %v609_v8  ;;  %795 = vmatpush1.msra.mxu1 %v673_v9  ;;  %v706_v7 = vld [vmem:[#allocation8 + $0x3e8] sm:$0xff]  ;;  %v641_v8 = vld [vmem:[#allocation8 + $0x1e0] sm:$0xff] }
  0xac   : > { %725 = vmatprep.subr.mxu0 %v608_v10  ;;  %796 = vmatprep.subr.mxu1 %v672_v11  ;;  %v705_v9 = vld [vmem:[#allocation8 + $0x3e0] sm:$0xff]  ;;  %v640_v10 = vld [vmem:[#allocation8 + $0x1d8] sm:$0xff] }
  0xad   : > { %726 = vmatpush1.msra.mxu0 %v607_v12  ;;  %797 = vmatpush1.msra.mxu1 %v671_v13  ;;  %v704_v11 = vld [vmem:[#allocation8 + $0x3d8] sm:$0xff]  ;;  %v639_v12 = vld [vmem:[#allocation8 + $0x1d0] sm:$0xff] }
  0xae   : > { %727 = vmatprep.subr.mxu0 %v606_v14  ;;  %798 = vmatprep.subr.mxu1 %v670_v15  ;;  %v703_v13 = vld [vmem:[#allocation8 + $0x3d0] sm:$0xff]  ;;  %v638_v14 = vld [vmem:[#allocation8 + $0x1c8] sm:$0xff] }
  0xaf   : > { %728 = vmatpush1.msra.mxu0 %v605_v16  ;;  %799 = vmatpush1.msra.mxu1 %v669_v17  ;;  %v702_v15 = vld [vmem:[#allocation8 + $0x3c8] sm:$0xff]  ;;  %v637_v16 = vld [vmem:[#allocation8 + $0x1c0] sm:$0xff] }
  0xb0   : > { %729 = vmatprep.subr.mxu0 %v604_v18  ;;  %800 = vmatprep.subr.mxu1 %v668_v19  ;;  %v701_v17 = vld [vmem:[#allocation8 + $0x3c0] sm:$0xff]  ;;  %v636_v18 = vld [vmem:[#allocation8 + $0x1b8] sm:$0xff] }
  0xb1   : > { %730 = vmatpush1.msra.mxu0 %v603_v20  ;;  %801 = vmatpush1.msra.mxu1 %v667_v21  ;;  %v700_v19 = vld [vmem:[#allocation8 + $0x3b8] sm:$0xff]  ;;  %v635_v20 = vld [vmem:[#allocation8 + $0x1b0] sm:$0xff] }
  0xb2   : > { %731 = vmatprep.subr.mxu0 %v602_v22  ;;  %802 = vmatprep.subr.mxu1 %v666_v23  ;;  %v699_v21 = vld [vmem:[#allocation8 + $0x3b0] sm:$0xff]  ;;  %v634_v22 = vld [vmem:[#allocation8 + $0x1a8] sm:$0xff] }
  0xb3   : > { %732 = vmatpush1.msra.mxu0 %v601_v24  ;;  %803 = vmatpush1.msra.mxu1 %v665_v25  ;;  %v698_v23 = vld [vmem:[#allocation8 + $0x3a8] sm:$0xff]  ;;  %v633_v24 = vld [vmem:[#allocation8 + $0x1a0] sm:$0xff] }
  0xb4   : > { %733 = vmatprep.subr.mxu0 %v600_v26  ;;  %804 = vmatprep.subr.mxu1 %v664_v27  ;;  %v697_v25 = vld [vmem:[#allocation8 + $0x3a0] sm:$0xff]  ;;  %v632_v26 = vld [vmem:[#allocation8 + $0x198] sm:$0xff] }
  0xb5   : > { %734 = vmatpush1.msra.mxu0 %v599_v28  ;;  %805 = vmatpush1.msra.mxu1 %v663_v29  ;;  %v696_v27 = vld [vmem:[#allocation8 + $0x398] sm:$0xff]  ;;  %v631_v28 = vld [vmem:[#allocation8 + $0x190] sm:$0xff] }
  0xb6   : > { %735 = vmatprep.subr.mxu0 %v598_v30  ;;  %806 = vmatprep.subr.mxu1 %v662_v31  ;;  %v695_v29 = vld [vmem:[#allocation8 + $0x390] sm:$0xff]  ;;  %v630_v30 = vld [vmem:[#allocation8 + $0x188] sm:$0xff] }
  0xb7   : > { %736 = vmatpush1.msra.mxu0 %v597_v32  ;;  %807 = vmatpush1.msra.mxu1 %v661_v33  ;;  %v694_v31 = vld [vmem:[#allocation8 + $0x388] sm:$0xff]  ;;  %v629_v32 = vld [vmem:[#allocation8 + $0x180] sm:$0xff] }
  0xb8   : > { %737 = vmatprep.subr.mxu0 %v596_v34  ;;  %808 = vmatprep.subr.mxu1 %v660_v35  ;;  %v693_v33 = vld [vmem:[#allocation8 + $0x380] sm:$0xff]  ;;  %v628_v34 = vld [vmem:[#allocation8 + $0x178] sm:$0xff] }
  0xb9   : > { %738 = vmatpush1.msra.mxu0 %v595_v36  ;;  %809 = vmatpush1.msra.mxu1 %v659_v37  ;;  %v692_v35 = vld [vmem:[#allocation8 + $0x378] sm:$0xff]  ;;  %v627_v36 = vld [vmem:[#allocation8 + $0x170] sm:$0xff] }
  0xba   : > { %739 = vmatprep.subr.mxu0 %v594_v38  ;;  %810 = vmatprep.subr.mxu1 %v658_v39  ;;  %v691_v37 = vld [vmem:[#allocation8 + $0x370] sm:$0xff]  ;;  %v626_v38 = vld [vmem:[#allocation8 + $0x168] sm:$0xff] }
  0xbb   : > { %740 = vmatpush1.msra.mxu0 %v593_v40  ;;  %811 = vmatpush1.msra.mxu1 %v657_v41  ;;  %v690_v39 = vld [vmem:[#allocation8 + $0x368] sm:$0xff]  ;;  %v625_v40 = vld [vmem:[#allocation8 + $0x160] sm:$0xff] }
  0xbc   : > { %741 = vmatprep.subr.mxu0 %v592_v42  ;;  %812 = vmatprep.subr.mxu1 %v656_v43  ;;  %v689_v41 = vld [vmem:[#allocation8 + $0x360] sm:$0xff]  ;;  %v624_v42 = vld [vmem:[#allocation8 + $0x158] sm:$0xff] }
  0xbd   : > { %742 = vmatpush1.msra.mxu0 %v591_v44  ;;  %813 = vmatpush1.msra.mxu1 %v655_v45  ;;  %v688_v43 = vld [vmem:[#allocation8 + $0x358] sm:$0xff]  ;;  %v623_v44 = vld [vmem:[#allocation8 + $0x150] sm:$0xff] }
  0xbe   : > { %743 = vmatprep.subr.mxu0 %v590_v46  ;;  %814 = vmatprep.subr.mxu1 %v654_v47  ;;  %v687_v45 = vld [vmem:[#allocation8 + $0x350] sm:$0xff]  ;;  %v622_v46 = vld [vmem:[#allocation8 + $0x148] sm:$0xff] }
  0xbf   : > { %744 = vmatpush1.msra.mxu0 %v589_v48  ;;  %815 = vmatpush1.msra.mxu1 %v653_v49  ;;  %v686_v47 = vld [vmem:[#allocation8 + $0x348] sm:$0xff]  ;;  %v621_v48 = vld [vmem:[#allocation8 + $0x140] sm:$0xff] }
  0xc0   : > { %745 = vmatprep.subr.mxu0 %v588_v50  ;;  %816 = vmatprep.subr.mxu1 %v652_v51  ;;  %v685_v49 = vld [vmem:[#allocation8 + $0x340] sm:$0xff]  ;;  %v620_v50 = vld [vmem:[#allocation8 + $0x138] sm:$0xff] }
  0xc1   : > { %746 = vmatpush1.msra.mxu0 %v587_v52  ;;  %817 = vmatpush1.msra.mxu1 %v651_v53  ;;  %v684_v51 = vld [vmem:[#allocation8 + $0x338] sm:$0xff]  ;;  %v619_v52 = vld [vmem:[#allocation8 + $0x130] sm:$0xff] }
  0xc2   : > { %747 = vmatprep.subr.mxu0 %v586_v54  ;;  %818 = vmatprep.subr.mxu1 %v650_v55  ;;  %v683_v53 = vld [vmem:[#allocation8 + $0x330] sm:$0xff]  ;;  %v618_v54 = vld [vmem:[#allocation8 + $0x128] sm:$0xff] }
  0xc3   : > { %748 = vmatpush1.msra.mxu0 %v585_v56  ;;  %819 = vmatpush1.msra.mxu1 %v649_v57  ;;  %v682_v55 = vld [vmem:[#allocation8 + $0x328] sm:$0xff]  ;;  %v617_v56 = vld [vmem:[#allocation8 + $0x120] sm:$0xff] }
  0xc4   : > { %749 = vmatprep.subr.mxu0 %v584_v58  ;;  %820 = vmatprep.subr.mxu1 %v648_v59  ;;  %v681_v57 = vld [vmem:[#allocation8 + $0x320] sm:$0xff]  ;;  %v616_v58 = vld [vmem:[#allocation8 + $0x118] sm:$0xff] }
  0xc5   : > { %750 = vmatpush1.msra.mxu0 %v583_v60  ;;  %821 = vmatpush1.msra.mxu1 %v647_v61  ;;  %v680_v59 = vld [vmem:[#allocation8 + $0x318] sm:$0xff]  ;;  %v615_v60 = vld [vmem:[#allocation8 + $0x110] sm:$0xff] }
  0xc6   : > { %751 = vmatprep.subr.mxu0 %v582_v62  ;;  %822 = vmatprep.subr.mxu1 %v646_v63  ;;  %v679_v61 = vld [vmem:[#allocation8 + $0x310] sm:$0xff]  ;;  %v614_v62 = vld [vmem:[#allocation8 + $0x108] sm:$0xff] }
  0xc7   : > { %752 = vmatpush1.msra.mxu0 %v581_v0  ;;  %823 = vmatpush1.msra.mxu1 %v645_v1  ;;  %v678_v63 = vld [vmem:[#allocation8 + $0x308] sm:$0xff]  ;;  %v613_v0 = vld [vmem:[#allocation8 + $0x100] sm:$0xff] }
  0xc8   : > { %753 = vmatprep.subr.mxu0 %v644_v2  ;;  %824 = vmatprep.subr.mxu1 %v708_v3  ;;  %v677_v1 = vld [vmem:[#allocation8 + $0x300] sm:$0xff]  ;;  %v415_v2 = vlaneseq }
  0xc9   : > { %754 = vmatpush2.msra.mxu0 %v643_v4  ;;  %825 = vmatpush2.msra.mxu1 %v707_v5 }
  0xca   : > { %755 = vmatprep.subr.mxu0 %v642_v6  ;;  %826 = vmatprep.subr.mxu1 %v706_v7  ;;  %v416_v3 = vshrl.u32 %v415_v2, 7  ;;  %v413_v6 = vld [vmem:[#allocation7] sm:$0xf] }
  0xcb   : > { %756 = vmatpush2.msra.mxu0 %v641_v8  ;;  %827 = vmatpush2.msra.mxu1 %v705_v9 }
  0xcc   : > { %757 = vmatprep.subr.mxu0 %v640_v10  ;;  %828 = vmatprep.subr.mxu1 %v704_v11  ;;  %v425_v4 = vsub.s32 2, %v416_v3  ;;  %v417_v5 = vsub.s32 0, %v416_v3  ;;  %v421_v7 = vsub.s32 1, %v416_v3  ;;  %v429_v8 = vsub.s32 3, %v416_v3 }
  0xcd   : > { %758 = vmatpush2.msra.mxu0 %v639_v12  ;;  %829 = vmatpush2.msra.mxu1 %v703_v13 }
  0xce   : > { %759 = vmatprep.subr.mxu0 %v638_v14  ;;  %830 = vmatprep.subr.mxu1 %v702_v15  ;;  %v426_v9 = vrot.slane %v413_v6, %v425_v4  ;;  %v418_v10 = vrot.slane %v413_v6, %v417_v5  ;;  %v422_v11 = vrot.slane %v413_v6, %v421_v7 }
  0xcf   : > { %760 = vmatpush2.msra.mxu0 %v637_v16  ;;  %831 = vmatpush2.msra.mxu1 %v701_v17  ;;  %v430_v12 = vrot.slane %v413_v6, %v429_v8 }
  0xd0   : > { %761 = vmatprep.subr.mxu0 %v636_v18  ;;  %832 = vmatprep.subr.mxu1 %v700_v19 }
  0xd1   : > { %762 = vmatpush2.msra.mxu0 %v635_v20  ;;  %833 = vmatpush2.msra.mxu1 %v699_v21 }
  0xd2   : > { %763 = vmatprep.subr.mxu0 %v634_v22  ;;  %834 = vmatprep.subr.mxu1 %v698_v23 }
  0xd3   : > { %764 = vmatpush2.msra.mxu0 %v633_v24  ;;  %835 = vmatpush2.msra.mxu1 %v697_v25  ;;  %v709_v25 = vld [vmem:[%s1493_s4] sm:$0x3] }
  0xd4   : > { %765 = vmatprep.subr.mxu0 %v632_v26  ;;  %836 = vmatprep.subr.mxu1 %v696_v27  ;;  %v714_v26 = vrot.slane %v709_v25, %v417_v5  ;;  %v718_v27 = vrot.slane %v709_v25, %v421_v7 }
  0xd5   : > { %766 = vmatpush2.msra.mxu0 %v631_v28  ;;  %837 = vmatpush2.msra.mxu1 %v695_v29 }
  0xd6   : > { %767 = vmatprep.subr.mxu0 %v630_v30  ;;  %838 = vmatprep.subr.mxu1 %v694_v31 }
  0xd7   : > { %768 = vmatpush2.msra.mxu0 %v629_v32  ;;  %839 = vmatpush2.msra.mxu1 %v693_v33 }
  0xd8   : > { %769 = vmatprep.subr.mxu0 %v628_v34  ;;  %840 = vmatprep.subr.mxu1 %v692_v35 }
  0xd9   : > { %770 = vmatpush2.msra.mxu0 %v627_v36  ;;  %841 = vmatpush2.msra.mxu1 %v691_v37 }
  0xda   : > { %771 = vmatprep.subr.mxu0 %v626_v38  ;;  %842 = vmatprep.subr.mxu1 %v690_v39 }
  0xdb   : > { %772 = vmatpush2.msra.mxu0 %v625_v40  ;;  %843 = vmatpush2.msra.mxu1 %v689_v41 }
  0xdc   : > { %773 = vmatprep.subr.mxu0 %v624_v42  ;;  %844 = vmatprep.subr.mxu1 %v688_v43 }
  0xdd   : > { %774 = vmatpush2.msra.mxu0 %v623_v44  ;;  %845 = vmatpush2.msra.mxu1 %v687_v45 }
  0xde   : > { %775 = vmatprep.subr.mxu0 %v622_v46  ;;  %846 = vmatprep.subr.mxu1 %v686_v47 }
  0xdf   : > { %776 = vmatpush2.msra.mxu0 %v621_v48  ;;  %847 = vmatpush2.msra.mxu1 %v685_v49 }
  0xe0   : > { %777 = vmatprep.subr.mxu0 %v620_v50  ;;  %848 = vmatprep.subr.mxu1 %v684_v51 }
  0xe1   : > { %778 = vmatpush2.msra.mxu0 %v619_v52  ;;  %849 = vmatpush2.msra.mxu1 %v683_v53 }
  0xe2   : > { %779 = vmatprep.subr.mxu0 %v618_v54  ;;  %850 = vmatprep.subr.mxu1 %v682_v55 }
  0xe3   : > { %780 = vmatpush2.msra.mxu0 %v617_v56  ;;  %851 = vmatpush2.msra.mxu1 %v681_v57 }
  0xe4   : > { %781 = vmatprep.subr.mxu0 %v616_v58  ;;  %852 = vmatprep.subr.mxu1 %v680_v59 }
  0xe5   : > { %782 = vmatpush2.msra.mxu0 %v615_v60  ;;  %853 = vmatpush2.msra.mxu1 %v679_v61 }
  0xe6   : > { %783 = vmatprep.subr.mxu0 %v614_v62  ;;  %854 = vmatprep.subr.mxu1 %v678_v63 }
  0xe7   : > { %784 = vmatpush2.msra.mxu0 %v613_v0  ;;  %855 = vmatpush2.msra.mxu1 %v677_v1 }
 0x167   : > { %v501_v13 = vpop.f32.mrf.mxu0  ;;  %v572_v14 = vpop.f32.mrf.mxu1 }
 0x168   : > { %v573_v15 = vadd.f32 %v572_v14, %v426_v9  ;;  %v502_v16 = vadd.f32 %v501_v13, %v418_v10 }
 0x169   : > { %v503_v17 = vpop.f32.mrf.mxu0  ;;  %v574_v18 = vpop.f32.mrf.mxu1 }
 0x16a   : > { %v504_v19 = vadd.f32 %v503_v17, %v422_v11  ;;  %v575_v20 = vadd.f32 %v574_v18, %v430_v12  ;;  %v579_v21 = vmax.f32 %v573_v15, 0.0  ;;  %v577_v24 = vmax.f32 %v502_v16, 0.0 }
 0x16c   : > { %v578_v22 = vmax.f32 %v504_v19, 0.0  ;;  %v580_v23 = vmax.f32 %v575_v20, 0.0 }
 0x16e   : > { %785 = vmatprep.mubr.f32.mxu0 %v578_v22  ;;  %856 = vmatprep.mubr.f32.mxu1 %v580_v23 }
 0x16f   : > { %786 = vmatmul.mubr.f32.vlgmr.msra.gmra.mxu0 %v577_v24  ;;  %857 = vmatmul.mubr.f32.vlgmr.msra.gmra.mxu1 %v579_v21 }
 0x22f   : > { %v787_v28 = vpop.f32.mrf.mxu0  ;;  %v858_v29 = vpop.f32.mrf.mxu1 }
 0x230   : > { %v788_v30 = vadd.f32 %v787_v28, %v714_v26 }
 0x231   : > { %v789_v31 = vpop.f32.mrf.mxu0  ;;  %v860_v34 = vpop.f32.mrf.mxu1 }
 0x232   : > { %v859_v32 = vadd.f32 %v858_v29, %v788_v30  ;;  %v790_v33 = vadd.f32 %v789_v31, %v718_v27 }
 0x234   : > { %863 = vst [vmem:[%s282_s17] sm:$0xff] %v859_v32  ;;  %v861_v35 = vadd.f32 %v860_v34, %v790_v33 }
 0x236   : > { %864 = vst [vmem:[%s282_s17 + $0x8] sm:$0xff] %v861_v35 }
 0x237   : > { %1201 = shalt.err (!%p1198_p9)
}
 0x238   : > { %s1202_s30 = scalar_lea.hbm %s878_s8, 256  ;;  %s1206_s9 = scalar_lea.hbm %s1494_s5, 512 }
 0x239   : > { %p1203_p13 = scmp.ne.s32.totalorder %s878_s8, %s1202_s30  ;;  %p1207_p11 = scmp.lt.s32.totalorder %s878_s8, %s1494_s5 }
 0x23a   : > { %p1208_p1 = scmp.lt.s32.totalorder %s1206_s9, %s1202_s30 }
 0x23b   : > { %p1204_p8 = pnand %p1203_p13, %p1512_p6 }
 0x23c   : > { %p1209_p2 = por %p1208_p1, %p1207_p11 }
 0x23d   : > { %p1205_p10 = pneg %p1204_p8 }
 0x23f   : > { %p1210_p4 = pnand %p1209_p2, %p1205_p10 }
 0x241   : > { %1213 = shalt.err (!%p1210_p4)
}
 0x242   : > { %1015 = dma.vmem_to_hbm [thread:$0]  (%p1512_p6), %s881_s23, 256, %s878_s8, %s866_s13  }
 0x243 PF: > { %s892_s15 = sand.u32 1, %s1248_s18   ;;  %p1513_p12 = scmp.ne.s32.totalorder %s1500_s25, 0 }
 0x244   : > { %p1514_p0 = scmp.ge.s32.totalorder %s1260_s21, 2  ;;  %s893_s17 = scalar_lea.sflag [#allocation4], %s892_s15 }
 0x246   : > { %p1032_p5 = pnand %p1514_p0, %p1513_p12 }
 0x248   : > { %p1033_p3 = pneg %p1032_p5 }
 0x24a   : > { %1243 = dma.done.wait (%p1033_p3), %s893_s17, 256  }
 0x24b   : > { %1245 = vsyncadd (%p1033_p3), %s893_s17, 4294967040  ;;  %p20_p7 = scmp.ge.s32.totalorder %s1381_s6, 4   ;;  %s1515_s18 = smov %s1252_s19 }
 0x24c   : > { %s1516_s19 = smov %s1256_s20  ;;  %s1517_s20 = smov %s1391_s10 }
 0x24d   : > { %s1518_s21 = smov %s1381_s6  ;;  %22 = sbr.rel (!%p20_p7) target bundleno = 7 (0x7), region = 97 }
 0x252   :  { %898 = vsyncpa [#allocation3], 1 }
 0x253   :  { %900 = vsyncpa [#allocation3 + $0x1], 1 }
 0x254   :  { %901 = vsyncpa [#allocation6], 1 }
 0x255   :  { %902 = vsyncpa [#allocation9], 1 }
 0x256   :  { %903 = vsyncpa [#allocation4], 1 }
 0x257   :  { %905 = vsyncpa [#allocation4 + $0x1], 1 }

</bundles_post_ra>
